<compile_context>
chip_gen: v7x
topology: tpu7x:2x2x1
jax: 0.10.0
libtpu: 0.0.40
codegen_flags: <defaults>
</compile_context>

<pallas_src>
import functools
import math

import jax
import jax.numpy as jnp
from jax import lax
from jax.experimental import pallas as pl
from jax.experimental.pallas import tpu as pltpu


# --------------------------------------------------------------------------
# Kernel: masked euclidean kNN adjacency + distance-valued dense edges
# --------------------------------------------------------------------------
def edge_builder_kernel(coords_all_ref, coords_row_ref, mask_send_ref,
                        mask_recv_ref, adj_ref, edges_ref,
                        *, clus_type, clus_val):
    N = coords_all_ref.shape[1]          # number of sender nodes (full)
    TR = coords_row_ref.shape[1]         # receiver-row tile
    n_crd = coords_all_ref.shape[2]
    row0 = pl.program_id(1) * TR         # global index of first receiver row

    coords_all = coords_all_ref[0].astype(jnp.float32)    # [N, n_crd]
    coords_r = coords_row_ref[0].astype(jnp.float32)      # [TR, n_crd]

    # --- pairwise squared euclidean distance via Gram matrix (MXU) ---------
    sq_r = jnp.sum(coords_r * coords_r, axis=-1, keepdims=True)          # [TR,1]
    ones_row = jnp.ones((1, n_crd), jnp.float32)
    sq_all = lax.dot_general(ones_row, coords_all * coords_all,
                             (((1,), (1,)), ((), ())),
                             preferred_element_type=jnp.float32)          # [1,N]
    gram = lax.dot_general(coords_r, coords_all, (((1,), (1,)), ((), ())),
                           preferred_element_type=jnp.float32)            # [TR,N]
    dist2 = jnp.maximum(sq_r + sq_all - 2.0 * gram, 0.0)                  # [TR,N]

    # --- validity: both nodes real, no self connections --------------------
    ii = row0 + lax.broadcasted_iota(jnp.int32, (TR, N), 0)
    jj = lax.broadcasted_iota(jnp.int32, (TR, N), 1)
    valid = ((mask_recv_ref[0] > 0.0) & (mask_send_ref[0] > 0.0)
             & (ii != jj))                                                # [TR,N]

    BIG = jnp.float32(1e30)              # stands in for pad_val = +inf
    dpad = jnp.where(valid, dist2, BIG)

    if clus_type == "knn":
        # O(k*N^2): k passes of masked row-min, ties broken by lower index.
        work = dpad
        selected = jnp.zeros((TR, N), dtype=jnp.bool_)
        for _ in range(clus_val):
            row_min = jnp.min(work, axis=-1, keepdims=True)               # [TR,1]
            cand = jnp.where(work == row_min, jj, N)
            amin = jnp.min(cand, axis=-1, keepdims=True)                  # [TR,1]
            pick = jj == amin
            selected = selected | pick
            work = jnp.where(pick, BIG, work)
        adj = selected & valid
    elif clus_type == "thresh":
        # squared distances are monotonic in distance for d >= 0
        adj = valid & (dpad < jnp.float32(clus_val) ** 2)
    else:  # "fc"
        adj = valid

    dist = jnp.sqrt(dist2)               # single sqrt over the tile (EUP slot)
    adj_ref[0] = adj.astype(jnp.float32)
    edges_ref[0] = jnp.where(adj, dist, 0.0)


def _pick_row_tile(n, budget_bytes=20 * 1024 * 1024):
    """Largest receiver-row tile (divides n, (8,128)-friendly) whose
    double-buffered output tiles fit in a modest VMEM budget."""
    if n <= 256:
        return n
    # two f32 [TR, N] outputs, double buffered: 2 * 2 * TR * N * 4 bytes
    max_tr = max(8, budget_bytes // (16 * n))
    for tr in (512, 256, 128, 64, 32, 16, 8):
        if tr <= max_tr and n % tr == 0:
            return tr
    return n


def edge_builder_call(coords, mask, *, clus_type, clus_val):
    B, N, n_crd = coords.shape
    TR = _pick_row_tile(N)
    mask_send = mask.reshape(B, 1, N).astype(jnp.float32)
    mask_recv = mask.reshape(B, N, 1).astype(jnp.float32)

    kernel = functools.partial(edge_builder_kernel, clus_type=clus_type,
                               clus_val=clus_val)

    adj, edges = pl.pallas_call(
        kernel,
        out_shape=(
            jax.ShapeDtypeStruct((B, N, N), jnp.float32),   # adjacency (0/1)
            jax.ShapeDtypeStruct((B, N, N), jnp.float32),   # dense 'dist' edges
        ),
        grid=(B, N // TR),
        in_specs=[
            pl.BlockSpec((1, N, n_crd), lambda b, r: (b, 0, 0)),   # all senders
            pl.BlockSpec((1, TR, n_crd), lambda b, r: (b, r, 0)),  # receiver tile
            pl.BlockSpec((1, 1, N), lambda b, r: (b, 0, 0)),       # sender mask
            pl.BlockSpec((1, TR, 1), lambda b, r: (b, r, 0)),      # receiver mask
        ],
        out_specs=(
            pl.BlockSpec((1, TR, N), lambda b, r: (b, r, 0)),
            pl.BlockSpec((1, TR, N), lambda b, r: (b, r, 0)),
        ),
        compiler_params=pltpu.CompilerParams(
            dimension_semantics=("parallel", "parallel"),
            vmem_limit_bytes=40 * 1024 * 1024),
    )(coords, coords, mask_send, mask_recv)
    return adj, edges


# --------------------------------------------------------------------------
# EdgeBuilder forward wrapper (mirrors the PyTorch module's forward)
# --------------------------------------------------------------------------
def edge_builder_forward(nodes, mask, *, clus_type="knn", clus_val=4,
                         edge_type="dist", crd_frc=0.5, strip=False,
                         measure="eucl"):
    assert clus_type in ("knn", "thresh", "fc")
    assert measure == "eucl"      # TODO(synk): measure='dot' not implemented
    assert edge_type == "dist"    # TODO(synk): 'same'/'diff' need ragged gather
    if clus_type == "fc" and strip:
        raise ValueError("Can not use strip with a fully connected adjmat")

    B, N, C = nodes.shape
    n_crd = math.ceil(crd_frc * C) if crd_frc <= 1 else int(crd_frc)

    coords = nodes[..., :n_crd]   # only the clustering coords enter the kernel
    adjmat, edges = edge_builder_call(coords, mask, clus_type=clus_type,
                                      clus_val=clus_val)
    new_nodes = nodes[..., n_crd:] if strip else nodes
    return {
        "nodes": new_nodes,     # [B, N, C] (strip=False -> unchanged)
        "edges": edges,         # [B, N, N] dense distances (implicit feat dim 1)
        "adjmat": adjmat,       # [B, N, N] 0/1
        "mask": mask,           # [B, N]
    }


# --------------------------------------------------------------------------
# Pure-JAX reference (different code path) for correctness checking
# --------------------------------------------------------------------------
def edge_builder_reference(nodes, mask, *, n_crd, clus_val):
    N = nodes.shape[1]
    coords = nodes[..., :n_crd]
    diff = coords[:, :, None, :] - coords[:, None, :, :]
    dist = jnp.sqrt(jnp.sum(diff * diff, axis=-1))
    m = mask > 0.0
    ii = jnp.arange(N)[:, None]
    jj = jnp.arange(N)[None, :]
    valid = m[:, :, None] & m[:, None, :] & (ii != jj)[None]
    dpad = jnp.where(valid, dist, jnp.float32(1e30))
    order = jnp.argsort(dpad, axis=-1)          # stable: ties -> lower index
    rank = jnp.argsort(order, axis=-1)
    adj = valid & (rank < clus_val)
    edges = jnp.where(adj, dist, 0.0)
    return adj.astype(jnp.float32), edges


# --------------------------------------------------------------------------
if __name__ == "__main__":
    B, N, C = 2, 16, 8
    crd_frc, clus_val = 0.5, 4

    key = jax.random.PRNGKey(0)
    nodes = jax.random.normal(key, (B, N, C), jnp.float32)
    # padded graph: batch 0 has 12 real nodes, batch 1 has all 16
    mask = jnp.stack([
        (jnp.arange(N) < 12).astype(jnp.float32),
        jnp.ones((N,), jnp.float32),
    ], axis=0)

    out = edge_builder_forward(nodes, mask, clus_type="knn", clus_val=clus_val,
                               edge_type="dist", crd_frc=crd_frc,
                               strip=False, measure="eucl")
    jax.block_until_ready(out)

    assert out["nodes"].shape == (B, N, C)
    assert out["adjmat"].shape == (B, N, N)
    assert out["edges"].shape == (B, N, N)

    n_crd = math.ceil(crd_frc * C)
    adj_ref, edges_ref = edge_builder_reference(nodes, mask, n_crd=n_crd,
                                                clus_val=clus_val)
    assert jnp.array_equal(out["adjmat"], adj_ref), "adjacency mismatch"
    assert jnp.allclose(out["edges"], edges_ref, rtol=1e-4, atol=1e-5), \
        "edge value mismatch"
    # every real receiver has at most k neighbours, padded receivers have none
    assert float(jnp.max(jnp.sum(out["adjmat"], axis=-1))) <= clus_val
    assert float(jnp.sum(out["adjmat"][0, 12:, :])) == 0.0

    print("KERNEL_OK")
</pallas_src>

<mosaic_0001>
module attributes {stable_mosaic.version = 11 : i64} {
  func.func @edge_builder_kernel(%arg0: i32, %arg1: i32, %arg2: memref<1x16x4xf32, #tpu.memory_space<vmem>>, %arg3: memref<1x16x4xf32, #tpu.memory_space<vmem>>, %arg4: memref<1x1x16xf32, #tpu.memory_space<vmem>>, %arg5: memref<1x16x1xf32, #tpu.memory_space<vmem>>, %arg6: memref<1x16x16xf32, #tpu.memory_space<vmem>>, %arg7: memref<1x16x16xf32, #tpu.memory_space<vmem>>) attributes {dimension_semantics = [#tpu.dimension_semantics<parallel>, #tpu.dimension_semantics<parallel>], iteration_bounds = array<i64: 2, 1>, scalar_prefetch = 0 : i64, scratch_operands = 0 : i64, tpu.core_type = #tpu.core_type<tc>, window_params = [{transform_indices = @transform_0, window_bounds = array<i64: 1, 16, 4>}, {transform_indices = @transform_1, window_bounds = array<i64: 1, 16, 4>}, {transform_indices = @transform_2, window_bounds = array<i64: 1, 1, 16>}, {transform_indices = @transform_3, window_bounds = array<i64: 1, 16, 1>}, {transform_indices = @transform_4, window_bounds = array<i64: 1, 16, 16>}, {transform_indices = @transform_5, window_bounds = array<i64: 1, 16, 16>}]} {
    %c16_i32 = arith.constant 16 : i32
    %0 = arith.muli %arg1, %c16_i32 : i32
    %c0 = arith.constant 0 : index
    %c0_0 = arith.constant 0 : index
    %c0_1 = arith.constant 0 : index
    %1 = vector.load %arg2[%c0, %c0_0, %c0_1] : memref<1x16x4xf32, #tpu.memory_space<vmem>>, vector<1x16x4xf32>
    %2 = vector.shape_cast %1 : vector<1x16x4xf32> to vector<16x4xf32>
    %c0_2 = arith.constant 0 : index
    %c0_3 = arith.constant 0 : index
    %c0_4 = arith.constant 0 : index
    %3 = vector.load %arg3[%c0_2, %c0_3, %c0_4] : memref<1x16x4xf32, #tpu.memory_space<vmem>>, vector<1x16x4xf32>
    %4 = vector.shape_cast %3 : vector<1x16x4xf32> to vector<16x4xf32>
    %5 = arith.mulf %4, %4 : vector<16x4xf32>
    %cst = arith.constant dense<0.000000e+00> : vector<16xf32>
    %6 = vector.multi_reduction <add>, %5, %cst [1] : vector<16x4xf32> to vector<16xf32>
    %7 = vector.shape_cast %6 : vector<16xf32> to vector<16x1xf32>
    %cst_5 = arith.constant 1.000000e+00 : f32
    %8 = vector.broadcast %cst_5 : f32 to vector<1x4xf32>
    %9 = arith.mulf %2, %2 : vector<16x4xf32>
    %cst_6 = arith.constant dense<0.000000e+00> : vector<1x16xf32>
    %10 = tpu.matmul %8, %9, %cst_6 {dimension_numbers = #tpu.dot_dimension_numbers<[1], [1], [0], [0], [0, 0, 1, 0], [], []>} : vector<1x4xf32>, vector<16x4xf32>, vector<1x16xf32> -> vector<1x16xf32>
    %cst_7 = arith.constant dense<0.000000e+00> : vector<16x16xf32>
    %11 = tpu.matmul %4, %2, %cst_7 {dimension_numbers = #tpu.dot_dimension_numbers<[1], [1], [0], [0], [0, 0, 1, 0], [], []>} : vector<16x4xf32>, vector<16x4xf32>, vector<16x16xf32> -> vector<16x16xf32>
    %12 = vector.broadcast %7 : vector<16x1xf32> to vector<16x16xf32>
    %13 = vector.broadcast %10 : vector<1x16xf32> to vector<16x16xf32>
    %14 = arith.addf %12, %13 : vector<16x16xf32>
    %cst_8 = arith.constant 2.000000e+00 : f32
    %15 = vector.broadcast %cst_8 : f32 to vector<16x16xf32>
    %16 = arith.mulf %15, %11 : vector<16x16xf32>
    %17 = arith.subf %14, %16 : vector<16x16xf32>
    %cst_9 = arith.constant 0.000000e+00 : f32
    %18 = vector.broadcast %cst_9 : f32 to vector<16x16xf32>
    %19 = arith.maximumf %17, %18 : vector<16x16xf32>
    %20 = tpu.iota {dimensions = array<i32: 0>} : vector<16x16xi32>
    %21 = vector.broadcast %0 : i32 to vector<16x16xi32>
    %22 = arith.addi %21, %20 : vector<16x16xi32>
    %23 = tpu.iota {dimensions = array<i32: 1>} : vector<16x16xi32>
    %c0_10 = arith.constant 0 : index
    %c0_11 = arith.constant 0 : index
    %c0_12 = arith.constant 0 : index
    %24 = vector.load %arg5[%c0_10, %c0_11, %c0_12] : memref<1x16x1xf32, #tpu.memory_space<vmem>>, vector<1x16x1xf32>
    %25 = vector.shape_cast %24 : vector<1x16x1xf32> to vector<16x1xf32>
    %cst_13 = arith.constant 0.000000e+00 : f32
    %26 = vector.broadcast %cst_13 : f32 to vector<16x1xf32>
    %27 = arith.cmpf ogt, %25, %26 : vector<16x1xf32>
    %c0_14 = arith.constant 0 : index
    %c0_15 = arith.constant 0 : index
    %c0_16 = arith.constant 0 : index
    %28 = vector.load %arg4[%c0_14, %c0_15, %c0_16] : memref<1x1x16xf32, #tpu.memory_space<vmem>>, vector<1x1x16xf32>
    %29 = vector.shape_cast %28 : vector<1x1x16xf32> to vector<1x16xf32>
    %cst_17 = arith.constant 0.000000e+00 : f32
    %30 = vector.broadcast %cst_17 : f32 to vector<1x16xf32>
    %31 = arith.cmpf ogt, %29, %30 : vector<1x16xf32>
    %32 = vector.broadcast %27 : vector<16x1xi1> to vector<16x16xi1>
    %33 = vector.broadcast %31 : vector<1x16xi1> to vector<16x16xi1>
    %34 = arith.andi %32, %33 : vector<16x16xi1>
    %35 = arith.cmpi ne, %22, %23 : vector<16x16xi32>
    %36 = arith.andi %34, %35 : vector<16x16xi1>
    %cst_18 = arith.constant 1.000000e+30 : f32
    %37 = vector.broadcast %cst_18 : f32 to vector<16x16xf32>
    %38 = arith.select %36, %19, %37 : vector<16x16xi1>, vector<16x16xf32>
    %false = arith.constant false
    %39 = vector.broadcast %false : i1 to vector<16x16xi1>
    %cst_19 = arith.constant dense<0x7F800000> : vector<16xf32>
    %40 = vector.multi_reduction <minimumf>, %38, %cst_19 [1] : vector<16x16xf32> to vector<16xf32>
    %41 = vector.shape_cast %40 : vector<16xf32> to vector<16x1xf32>
    %42 = vector.broadcast %41 : vector<16x1xf32> to vector<16x16xf32>
    %43 = arith.cmpf oeq, %38, %42 : vector<16x16xf32>
    %c16_i32_20 = arith.constant 16 : i32
    %44 = vector.broadcast %c16_i32_20 : i32 to vector<16x16xi32>
    %45 = arith.select %43, %23, %44 : vector<16x16xi1>, vector<16x16xi32>
    %cst_21 = arith.constant dense<2147483647> : vector<16xi32>
    %46 = vector.multi_reduction <minsi>, %45, %cst_21 [1] : vector<16x16xi32> to vector<16xi32>
    %47 = vector.shape_cast %46 : vector<16xi32> to vector<16x1xi32>
    %48 = vector.broadcast %47 : vector<16x1xi32> to vector<16x16xi32>
    %49 = arith.cmpi eq, %23, %48 : vector<16x16xi32>
    %50 = arith.ori %39, %49 : vector<16x16xi1>
    %cst_22 = arith.constant 1.000000e+30 : f32
    %51 = vector.broadcast %cst_22 : f32 to vector<16x16xf32>
    %52 = arith.select %49, %51, %38 : vector<16x16xi1>, vector<16x16xf32>
    %cst_23 = arith.constant dense<0x7F800000> : vector<16xf32>
    %53 = vector.multi_reduction <minimumf>, %52, %cst_23 [1] : vector<16x16xf32> to vector<16xf32>
    %54 = vector.shape_cast %53 : vector<16xf32> to vector<16x1xf32>
    %55 = vector.broadcast %54 : vector<16x1xf32> to vector<16x16xf32>
    %56 = arith.cmpf oeq, %52, %55 : vector<16x16xf32>
    %c16_i32_24 = arith.constant 16 : i32
    %57 = vector.broadcast %c16_i32_24 : i32 to vector<16x16xi32>
    %58 = arith.select %56, %23, %57 : vector<16x16xi1>, vector<16x16xi32>
    %cst_25 = arith.constant dense<2147483647> : vector<16xi32>
    %59 = vector.multi_reduction <minsi>, %58, %cst_25 [1] : vector<16x16xi32> to vector<16xi32>
    %60 = vector.shape_cast %59 : vector<16xi32> to vector<16x1xi32>
    %61 = vector.broadcast %60 : vector<16x1xi32> to vector<16x16xi32>
    %62 = arith.cmpi eq, %23, %61 : vector<16x16xi32>
    %63 = arith.ori %50, %62 : vector<16x16xi1>
    %cst_26 = arith.constant 1.000000e+30 : f32
    %64 = vector.broadcast %cst_26 : f32 to vector<16x16xf32>
    %65 = arith.select %62, %64, %52 : vector<16x16xi1>, vector<16x16xf32>
    %cst_27 = arith.constant dense<0x7F800000> : vector<16xf32>
    %66 = vector.multi_reduction <minimumf>, %65, %cst_27 [1] : vector<16x16xf32> to vector<16xf32>
    %67 = vector.shape_cast %66 : vector<16xf32> to vector<16x1xf32>
    %68 = vector.broadcast %67 : vector<16x1xf32> to vector<16x16xf32>
    %69 = arith.cmpf oeq, %65, %68 : vector<16x16xf32>
    %c16_i32_28 = arith.constant 16 : i32
    %70 = vector.broadcast %c16_i32_28 : i32 to vector<16x16xi32>
    %71 = arith.select %69, %23, %70 : vector<16x16xi1>, vector<16x16xi32>
    %cst_29 = arith.constant dense<2147483647> : vector<16xi32>
    %72 = vector.multi_reduction <minsi>, %71, %cst_29 [1] : vector<16x16xi32> to vector<16xi32>
    %73 = vector.shape_cast %72 : vector<16xi32> to vector<16x1xi32>
    %74 = vector.broadcast %73 : vector<16x1xi32> to vector<16x16xi32>
    %75 = arith.cmpi eq, %23, %74 : vector<16x16xi32>
    %76 = arith.ori %63, %75 : vector<16x16xi1>
    %cst_30 = arith.constant 1.000000e+30 : f32
    %77 = vector.broadcast %cst_30 : f32 to vector<16x16xf32>
    %78 = arith.select %75, %77, %65 : vector<16x16xi1>, vector<16x16xf32>
    %cst_31 = arith.constant dense<0x7F800000> : vector<16xf32>
    %79 = vector.multi_reduction <minimumf>, %78, %cst_31 [1] : vector<16x16xf32> to vector<16xf32>
    %80 = vector.shape_cast %79 : vector<16xf32> to vector<16x1xf32>
    %81 = vector.broadcast %80 : vector<16x1xf32> to vector<16x16xf32>
    %82 = arith.cmpf oeq, %78, %81 : vector<16x16xf32>
    %c16_i32_32 = arith.constant 16 : i32
    %83 = vector.broadcast %c16_i32_32 : i32 to vector<16x16xi32>
    %84 = arith.select %82, %23, %83 : vector<16x16xi1>, vector<16x16xi32>
    %cst_33 = arith.constant dense<2147483647> : vector<16xi32>
    %85 = vector.multi_reduction <minsi>, %84, %cst_33 [1] : vector<16x16xi32> to vector<16xi32>
    %86 = vector.shape_cast %85 : vector<16xi32> to vector<16x1xi32>
    %87 = vector.broadcast %86 : vector<16x1xi32> to vector<16x16xi32>
    %88 = arith.cmpi eq, %23, %87 : vector<16x16xi32>
    %89 = arith.ori %76, %88 : vector<16x16xi1>
    %90 = arith.andi %89, %36 : vector<16x16xi1>
    %91 = math.sqrt %19 : vector<16x16xf32>
    %92 = arith.extui %90 : vector<16x16xi1> to vector<16x16xi32>
    %93 = arith.sitofp %92 : vector<16x16xi32> to vector<16x16xf32>
    %c0_34 = arith.constant 0 : index
    %c0_35 = arith.constant 0 : index
    %c0_36 = arith.constant 0 : index
    %94 = vector.load %arg6[%c0_34, %c0_35, %c0_36] : memref<1x16x16xf32, #tpu.memory_space<vmem>>, vector<1x16x16xf32>
    %95 = vector.shape_cast %94 : vector<1x16x16xf32> to vector<16x16xf32>
    %96 = vector.shape_cast %93 : vector<16x16xf32> to vector<1x16x16xf32>
    tpu.vector_store %arg6[%c0_34, %c0_35, %c0_36], %96 {strides = array<i32>} : memref<1x16x16xf32, #tpu.memory_space<vmem>>, vector<1x16x16xf32>,
    %cst_37 = arith.constant 0.000000e+00 : f32
    %97 = vector.broadcast %cst_37 : f32 to vector<16x16xf32>
    %98 = arith.select %90, %91, %97 : vector<16x16xi1>, vector<16x16xf32>
    %c0_38 = arith.constant 0 : index
    %c0_39 = arith.constant 0 : index
    %c0_40 = arith.constant 0 : index
    %99 = vector.load %arg7[%c0_38, %c0_39, %c0_40] : memref<1x16x16xf32, #tpu.memory_space<vmem>>, vector<1x16x16xf32>
    %100 = vector.shape_cast %99 : vector<1x16x16xf32> to vector<16x16xf32>
    %101 = vector.shape_cast %98 : vector<16x16xf32> to vector<1x16x16xf32>
    tpu.vector_store %arg7[%c0_38, %c0_39, %c0_40], %101 {strides = array<i32>} : memref<1x16x16xf32, #tpu.memory_space<vmem>>, vector<1x16x16xf32>,
    return
  }
  func.func @transform_0(%arg0: i32, %arg1: i32) -> (i32, i32, i32) {
    %c0_i32 = arith.constant 0 : i32
    %c0_i32_0 = arith.constant 0 : i32
    %c0_i32_1 = arith.constant 0 : i32
    return %arg0, %c0_i32, %c0_i32_0 : i32, i32, i32
  }
  func.func @transform_1(%arg0: i32, %arg1: i32) -> (i32, i32, i32) {
    %c0_i32 = arith.constant 0 : i32
    %c0_i32_0 = arith.constant 0 : i32
    return %arg0, %arg1, %c0_i32 : i32, i32, i32
  }
  func.func @transform_2(%arg0: i32, %arg1: i32) -> (i32, i32, i32) {
    %c0_i32 = arith.constant 0 : i32
    %c0_i32_0 = arith.constant 0 : i32
    %c0_i32_1 = arith.constant 0 : i32
    return %arg0, %c0_i32, %c0_i32_0 : i32, i32, i32
  }
  func.func @transform_3(%arg0: i32, %arg1: i32) -> (i32, i32, i32) {
    %c0_i32 = arith.constant 0 : i32
    %c0_i32_0 = arith.constant 0 : i32
    return %arg0, %arg1, %c0_i32 : i32, i32, i32
  }
  func.func @transform_4(%arg0: i32, %arg1: i32) -> (i32, i32, i32) {
    %c0_i32 = arith.constant 0 : i32
    %c0_i32_0 = arith.constant 0 : i32
    return %arg0, %arg1, %c0_i32 : i32, i32, i32
  }
  func.func @transform_5(%arg0: i32, %arg1: i32) -> (i32, i32, i32) {
    %c0_i32 = arith.constant 0 : i32
    %c0_i32_0 = arith.constant 0 : i32
    return %arg0, %arg1, %c0_i32 : i32, i32, i32
  }
}

</mosaic_0001>

<bundles_post_ra>
// kernel: tpu_custom_call.1
= control target key start
LH: loop header
LB: loop body
LE: loop exit
PB: predicated region body
PF: predicated region fallthrough
CT: control target
= control target key end

     0   :  { %11 = vsyncpa [#allocation3], 0  ;;  %s1561_s0 = inlined_call_operand.vmem [shape: f32[2,16,4], index: 0, kind: input, shape index: {}]   ;;  %s1562_s1 = inlined_call_operand.vmem [shape: f32[2,16,4], index: 1, kind: input, shape index: {}]   ;;  %s1563_s2 = inlined_call_operand.vmem [shape: f32[2,1,16], index: 2, kind: input, shape index: {}]   ;;  %s1564_s3 = inlined_call_operand.vmem [shape: f32[2,16,1], index: 3, kind: input, shape index: {}]   ;;  %s1565_s4 = inlined_call_operand.hbm [shape: f32[2,16,16], index: 4, kind: output, shape index: {0}]   ;;  %s1566_s5 = inlined_call_operand.hbm [shape: f32[2,16,16], index: 5, kind: output, shape index: {1}]  }
   0x1   :  { %13 = vsyncpa [#allocation3 + $0x1], 0 }
   0x2   :  { %14 = vsyncpa [#allocation5], 0 }
   0x3   :  { %16 = vsyncpa [#allocation5 + $0x1], 0  ;;  %s1259_s18 = smov 0   ;;  %s1261_s19 = smov 0  }
   0x4   :  { %s1263_s20 = smov 0   ;;  %s1265_s21 = smov 0  }
   0x5   :  { %s1267_s22 = smov 0   ;;  %s1269_s23 = smov 0  }
   0x6 LB: > { %s969_s24 = sadd.s32 4294967295, %s1218_s23   ;;  %s970_s25 = sadd.s32 4294967294, %s1218_s23   ;;  %s1218_s23 = sphi %s1269_s23, %s22_s23   ;;  %s1214_s22 = sphi %s1267_s22, %s1583_s22   ;;  %s1210_s21 = sphi %s1265_s21, %s1582_s21   ;;  %s1206_s20 = sphi %s1263_s20, %s1581_s20   ;;  %s1202_s19 = sphi %s1261_s19, %s1580_s19   ;;  %s1198_s18 = sphi %s1259_s18, %s1579_s18  }
   0x7   : > { %s34_s26 = sadd.s32 1, %s1214_s22  ;;  %s151_s27 = sadd.s32 1, %s1206_s20 }
   0x8   : > { %p36_p0 = scmp.ge.s32.totalorder %s34_s26, 2  ;;  %p161_p1 = scmp.ne.s32.totalorder %s1206_s20, %s1202_s19 }
   0x9   : > { %p162_p2 = scmp.eq.s32.totalorder %s969_s24, 1  ;;  %p167_p3 = scmp.ne.s32.totalorder %s1202_s19, %s1198_s18 }
   0xa   : > { %s1585_s26 = smov (%p36_p0, %s34_s26), 0  ;;  %p168_p5 = scmp.eq.s32.totalorder %s970_s25, 1 }
   0xb   : > { %p1299_p4 = por %p162_p2, %p161_p1  ;;  %s146_s29 = ssub.s32 %s1214_s22, %s1585_s26 }
   0xc   : > { %p973_p6 = scmp.ge.s32.totalorder %s1218_s23, 1  ;;  %p149_p7 = scmp.eq.s32.totalorder %s146_s29, 0 }
   0xd   : > { %p1306_p8 = por %p168_p5, %p167_p3  ;;  %p254_p9 = scmp.lt.s32.totalorder %s1218_s23, 3 }
   0xe   : > { %s1312_s6 = scalar_select %p149_p7, %s1206_s20, %s151_s27  }
   0xf   : > { %p255_p10 = pnand %p973_p6, %p254_p9 }
  0x10   : > { %p308_p11 = scmp.lt.s32.totalorder (!%p255_p10), %s1210_s21, 1  ;;  %v1220_v0 = vmov (!%p255_p10), 0.0|0.0   ;;  %vm1221_vm0 = vmmov (!%p255_p10), 0   ;;  %v1222_v1 = vmov (!%p255_p10), 0.0   ;;  %vm345_vm1 = vcmask (!%p255_p10), 31744   ;;  %s1441_s29 = sand.u32 (!%p255_p10), 1, %s1202_s19  }
  0x11   : > { %258 = sbr.rel (%p255_p10) target bundleno = 2073 (0x819), region = 36  ;;  %1025 = vmatprep.subr.bf16.mxu0 (!%p255_p10), %v1220_v0  ;;  %1015 = vmatprep.mubr.msk.f32.mxu0 (!%p255_p10), %vm1221_vm0, %v1222_v1  ;;  %v1223_v2 = vmov (!%p255_p10), 0   ;;  %vm1325_vm2 = vmpackc.low (!%p255_p10), %vm345_vm1, %vm345_vm1  ;;  %v1224_v20 = vmov (!%p255_p10), 1.0   ;;  %v520_v21 = vlaneseq (!%p255_p10)  ;;  %vm570_vm15 = vcmask (!%p255_p10), 130048   ;;  %s778_s24 = scalar_lea.sflag (!%p255_p10), [#allocation3], %s1441_s29 }
  0x12   : > { %1102 = vset.pattern.permute.xlu1 (!%p255_p10), %v1223_v2  ;;  %1103 = vset.pattern.permute.xlu0 (!%p255_p10), %v1223_v2 }
  0x13   : > { %v521_v23 = vshrl.u32 (!%p255_p10), %v520_v21, 7  ;;  %v1350_v30 = vand.u32 (!%p255_p10), 127, %v520_v21 }
  0x15   : > { %v522_v27 = vsub.s32 (!%p255_p10), 0, %v521_v23  ;;  %v534_v33 = vadd.s32 (!%p255_p10), 8, %v521_v23  ;;  %vm564_vm9 = vcmp.ne.s32.totalorder (!%p255_p10), %v521_v23, %v1350_v30 }
  0x17   : > { %vm565_vm11 = vcmp.ne.s32.totalorder (!%p255_p10), %v534_v33, %v1350_v30 }
  0x18   : > { %s1317_s7 = scalar_select %p308_p11, %s1210_s21, 1 }
  0x1a   : > { %s999_s8 = sshll.u32 %s1317_s7, 4  ;;  %s325_s27 = scalar_lea.vmem %s1563_s2, %s1317_s7 }
  0x1b   : > { %s312_s11 = scalar_lea.vmem %s1561_s0, %s999_s8  ;;  %s321_s14 = scalar_lea.vmem %s1562_s1, %s999_s8  ;;  %v544_v22 = vld [vmem:[%s325_s27] sm:$0x1] }
  0x1c   : > { %v339_v4 = vld [vmem:[%s312_s11] sm:$0xff]  ;;  %v340_v5 = vld [vmem:[%s312_s11 + $0x8] sm:$0xff]  ;;  %s334_s17 = scalar_lea.vmem %s1564_s3, %s999_s8  ;;  %vm545_vm5 = vcmp.gt.f32.partialorder %v544_v22, 0.0  ;;  %s974_s7 = sshll.u32 %s1441_s29, 4 }
  0x1d   : > { %v341_v6 = vld [vmem:[%s321_s14] sm:$0xff]  ;;  %v352_v7 = vmul.f32 %v339_v4, %v339_v4  ;;  %v353_v8 = vmul.f32 %v340_v5, %v340_v5  ;;  %v1029_v9 = vpack.c.bf16 %v340_v5, %v339_v4  ;;  %v342_v10 = vld [vmem:[%s321_s14 + $0x8] sm:$0xff]  ;;  %v556_v25 = vsel %vm545_vm5, 1, %v1223_v2  ;;  %s1002_s8 = sshll.u32 %s1210_s21, 8  ;;  %s300_s9 = scalar_lea.vmem [#allocation2], %s974_s7 }
  0x1e   : > { %v343_v11 = vmul.f32 %v341_v6, %v341_v6  ;;  %1022 = vmatprep.mubr.msk.f32.mxu1 %vm345_vm1, %v341_v6  ;;  %v540_v12 = vld [vmem:[%s334_s17] sm:$0xff]  ;;  %v541_v13 = vld [vmem:[%s334_s17 + $0x8] sm:$0xff]  ;;  %v344_v14 = vmul.f32 %v342_v10, %v342_v10  ;;  %v560_v28 = vrot.slane %v556_v25, %v522_v27  ;;  %s798_s10 = sshll.u32 %s300_s9, 4  ;;  %s307_s11 = scalar_lea.vmem [#allocation4], %s974_s7  ;;  %s1471_s10 = int_to_ptr.vmem [resolvable:$true] %s798_s10 }
  0x1f   : > { %vm542_vm3 = vcmp.gt.f32.partialorder %v540_v12, 0.0  ;;  %1031 = vmatprep.subr.msk.bf16.mxu1 %vm1325_vm2, %v1029_v9  ;;  %v1026_v15 = vpack.c.bf16 %v353_v8, %v352_v7  ;;  %vm543_vm4 = vcmp.gt.f32.partialorder %v541_v13, 0.0  ;;  %s1466_s13 = scalar_lea.hbm %s1565_s4, %s1002_s8  ;;  %s816_s14 = sshll.u32 %s307_s11, 4  ;;  %s1481_s14 = int_to_ptr.vmem [resolvable:$true] %s816_s14 }
  0x20   : > { %v346_v16 = vsel %vm345_vm1, %v343_v11, 0.0  ;;  %v546_v17 = vsel %vm542_vm3, 1, %v1223_v2  ;;  %1034 = vmatpush3.bf16.xpose.msk.msra.mxu1 %vm1325_vm2, %v1029_v9  ;;  %v349_v18 = vsel %vm345_vm1, %v344_v14, 0.0  ;;  %v547_v19 = vsel %vm543_vm4, 1, %v1223_v2  ;;  %s1479_s17 = scalar_lea.hbm %s1566_s5, %s1002_s8  ;;  %s1108_s25 = scalar_lea.vmem %s1471_s10, 256 }
  0x21   : > { %347 = vadd.xlane.f32.xlu0 %v346_v16  ;;  %1028 = vmatpush3.bf16.xpose.msk.msra.mxu0 %vm1325_vm2, %v1026_v15  ;;  %vm561_vm6 = vcmp.eq.s32.totalorder %v560_v28, 1  ;;  %p1109_p12 = scmp.ne.s32.totalorder %s1471_s10, %s1108_s25  ;;  %s1225_s27 = smov [#allocation2]  }
  0x22   : > { %549 = vperm.xlu1 %1102, %v546_v17   ;;  %s1112_s7 = sshll.u32 %s1225_s27, 4  ;;  %s1113_s7 = int_to_ptr.vmem [resolvable:$false] %s1112_s7 }
  0x23   : > { %p1110_p13 = pnand %p1109_p12, %p1299_p4  ;;  %s1114_s21 = scalar_lea.vmem %s1113_s7, 512 }
  0x24   : > { %p1115_p1 = scmp.lt.s32.totalorder %s1471_s10, %s1113_s7  ;;  %p1116_p2 = scmp.lt.s32.totalorder %s1114_s21, %s1108_s25 }
  0x25   : > { %350 = vadd.xlane.f32.xlu0 %v349_v18  ;;  %p1111_p0 = pneg %p1110_p13 }
  0x26   : > { %552 = vperm.xlu1 %1102, %v547_v19   ;;  %p1117_p3 = por %p1116_p2, %p1115_p1 }
  0x27   : > { %1023 = vmatmul.mubr.msk.f32.vlgmr.msra.gmra.mrb[0].mxu1 %vm345_vm1, %v342_v10 }
  0x28   : > { %1016 = vmatmul.mubr.msk.f32.vlgmr.msra.gmra.mrb[0].mxu0 %vm345_vm1, %v1224_v20  ;;  %p1118_p5 = pnand %p1117_p3, %p1111_p0 }
  0xa1   : > { %v550_v24 = vpop.permute.xlu1 %549 }
  0xa2   : > { %vm554_vm7 = vcmp.eq.s32.totalorder %v550_v24, 1 }
  0xa3   : > { %vm562_vm10 = vmand %vm554_vm7, %vm561_vm6 }
  0xa4   : > { %vm1356_vm13 = vmand %vm562_vm10, %vm564_vm9 }
  0xa5   : > { %v553_v29 = vpop.permute.xlu1 %552 }
  0xa6   : > { %vm555_vm8 = vcmp.eq.s32.totalorder %v553_v29, 1 }
  0xa7   : > { %vm563_vm12 = vmand %vm555_vm8, %vm561_vm6 }
  0xa8   : > { %vm1360_vm14 = vmand %vm563_vm12, %vm565_vm11 }
  0xae   : > { %v348_v26 = vpop.xlane.xlu0 %347 }
  0xb2   : > { %v351_v32 = vpop.xlane.xlu0 %350 }
  0xfa   : > { %v1024_v31 = vpop.f32.mrb[0].mxu1 }
  0xfb   : > { %v429_v34 = vpop.f32.mrb[0].mxu0  ;;  %v511_v35 = vpop.f32.mrb[1].mxu1  ;;  %v527_v37 = vmul.f32 2.0, %v1024_v31 }
  0xfc   : > { %v523_v36 = vrot.slane %v429_v34, %v522_v27  ;;  %v1017_v38 = vpop.f32.mrb[1].mxu0  ;;  %v526_v39 = vmul.f32 2.0, %v511_v35 }
  0xfe   : > { %v524_v40 = vadd.f32 %v523_v36, %v348_v26  ;;  %v525_v41 = vadd.f32 %v523_v36, %v351_v32 }
 0x100   : > { %v528_v43 = vsub.f32 %v524_v40, %v526_v39  ;;  %v529_v44 = vsub.f32 %v525_v41, %v527_v37 }
 0x102   : > { %v1364_v46 = vmax.f32 %v528_v43, 0.0  ;;  %v1366_v47 = vmax.f32 %v529_v44, 0.0 }
 0x104   : > { %v569_v48 = vsel %vm1360_vm14, %v1366_v47, 1e+30  ;;  %v568_v49 = vsel %vm1356_vm13, %v1364_v46, 1e+30  ;;  %1104 = vrsqrt.f32 %v1364_v46 }
 0x105   : > { %v574_v50 = vsel %vm570_vm15, %v569_v48, inf  ;;  %v571_v51 = vsel %vm570_vm15, %v568_v49, inf  ;;  %1106 = vrsqrt.f32 %v1366_v47 }
 0x106   : > { %575 = vmin.xlane.f32.xlu1 %v574_v50  ;;  %572 = vmin.xlane.f32.xlu0 %v571_v51 }
 0x193   : > { %v576_v52 = vpop.xlane.xlu1 %575  ;;  %v573_v53 = vpop.xlane.xlu0 %572 }
 0x194   : > { %vm578_vm0 = vcmp.eq.f32.partialorder %v569_v48, %v576_v52  ;;  %vm577_vm1 = vcmp.eq.f32.partialorder %v568_v49, %v573_v53 }
 0x195   : > { %v580_v54 = vsel %vm578_vm0, %v1350_v30, 16  ;;  %v579_v55 = vsel %vm577_vm1, %v1350_v30, 16 }
 0x196   : > { %v596_v56 = vsel %vm570_vm15, %v580_v54, 2147483647  ;;  %v581_v57 = vsel %vm570_vm15, %v579_v55, 2147483647 }
 0x197   : > { %v583_v58 = vshra.s32 %v581_v57, 16  ;;  %v598_v60 = vshra.s32 %v596_v56, 16  ;;  %v582_v62 = vand.u32 65535, %v581_v57  ;;  %v597_v2 = vand.u32 65535, %v596_v56 }
 0x199   : > { %v585_v59 = vcvt.s32.f32 %v583_v58  ;;  %v600_v61 = vcvt.s32.f32 %v598_v60  ;;  %v584_v0 = vcvt.s32.f32 %v582_v62  ;;  %v599_v5 = vcvt.s32.f32 %v597_v2 }
 0x19b   : > { %586 = vmin.xlane.f32.xlu0 %v585_v59 }
 0x19f   : > { %601 = vmin.xlane.f32.xlu0 %v600_v61 }
 0x228   : > { %v587_v63 = vpop.xlane.xlu0 %586 }
 0x229   : > { %vm588_vm2 = vcmp.eq.f32.partialorder %v585_v59, %v587_v63  ;;  %v593_v7 = vcvt.f32.s32 %v587_v63 }
 0x22a   : > { %v589_v3 = vsel %vm588_vm2, %v584_v0, inf }
 0x22b   : > { %590 = vmin.xlane.f32.xlu0 %v589_v3  ;;  %v594_v9 = vshll.u32 %v593_v7, 16 }
 0x22c   : > { %v602_v4 = vpop.xlane.xlu0 %601 }
 0x22d   : > { %vm603_vm3 = vcmp.eq.f32.partialorder %v600_v61, %v602_v4  ;;  %v608_v10 = vcvt.f32.s32 %v602_v4 }
 0x22e   : > { %v604_v6 = vsel %vm603_vm3, %v599_v5, inf }
 0x22f   : > { %605 = vmin.xlane.f32.xlu0 %v604_v6  ;;  %v609_v14 = vshll.u32 %v608_v10, 16 }
 0x2b8   : > { %v591_v8 = vpop.xlane.xlu0 %590 }
 0x2b9   : > { %v592_v11 = vcvt.f32.s32 %v591_v8 }
 0x2bb   : > { %v1380_v12 = vadd.s32 %v594_v9, %v592_v11 }
 0x2bc   : > { %v606_v13 = vpop.xlane.xlu0 %605 }
 0x2bd   : > { %v607_v15 = vcvt.f32.s32 %v606_v13  ;;  %vm611_vm4 = vcmp.eq.s32.totalorder %v1350_v30, %v1380_v12 }
 0x2be   : > { %v613_v16 = vsel %vm611_vm4, 1e+30, %v568_v49 }
 0x2bf   : > { %v1387_v17 = vadd.s32 %v609_v14, %v607_v15  ;;  %v615_v18 = vsel %vm570_vm15, %v613_v16, inf }
 0x2c0   : > { %616 = vmin.xlane.f32.xlu0 %v615_v18 }
 0x2c1   : > { %vm612_vm5 = vcmp.eq.s32.totalorder %v1350_v30, %v1387_v17 }
 0x2c2   : > { %v614_v19 = vsel %vm612_vm5, 1e+30, %v569_v48 }
 0x2c3   : > { %v618_v20 = vsel %vm570_vm15, %v614_v19, inf }
 0x2c4   : > { %619 = vmin.xlane.f32.xlu0 %v618_v20 }
 0x34d   : > { %v617_v21 = vpop.xlane.xlu0 %616 }
 0x34e   : > { %vm621_vm6 = vcmp.eq.f32.partialorder %v613_v16, %v617_v21 }
 0x34f   : > { %v623_v22 = vsel %vm621_vm6, %v1350_v30, 16 }
 0x350   : > { %v625_v23 = vsel %vm570_vm15, %v623_v22, 2147483647 }
 0x351   : > { %v620_v24 = vpop.xlane.xlu0 %619  ;;  %v627_v25 = vshra.s32 %v625_v23, 16  ;;  %v626_v32 = vand.u32 65535, %v625_v23 }
 0x352   : > { %vm622_vm7 = vcmp.eq.f32.partialorder %v614_v19, %v620_v24 }
 0x353   : > { %v624_v26 = vsel %vm622_vm7, %v1350_v30, 16  ;;  %v629_v27 = vcvt.s32.f32 %v627_v25  ;;  %v628_v34 = vcvt.s32.f32 %v626_v32 }
 0x354   : > { %v640_v28 = vsel %vm570_vm15, %v624_v26, 2147483647 }
 0x355   : > { %630 = vmin.xlane.f32.xlu0 %v629_v27  ;;  %v642_v29 = vshra.s32 %v640_v28, 16  ;;  %v641_v35 = vand.u32 65535, %v640_v28 }
 0x357   : > { %v644_v31 = vcvt.s32.f32 %v642_v29  ;;  %v643_v38 = vcvt.s32.f32 %v641_v35 }
 0x359   : > { %645 = vmin.xlane.f32.xlu0 %v644_v31 }
 0x3e2   : > { %v631_v33 = vpop.xlane.xlu0 %630 }
 0x3e3   : > { %vm632_vm8 = vcmp.eq.f32.partialorder %v629_v27, %v631_v33  ;;  %v637_v40 = vcvt.f32.s32 %v631_v33 }
 0x3e4   : > { %v633_v36 = vsel %vm632_vm8, %v628_v34, inf }
 0x3e5   : > { %634 = vmin.xlane.f32.xlu0 %v633_v36  ;;  %v638_v43 = vshll.u32 %v637_v40, 16 }
 0x3e6   : > { %v646_v37 = vpop.xlane.xlu0 %645 }
 0x3e7   : > { %vm647_vm9 = vcmp.eq.f32.partialorder %v644_v31, %v646_v37  ;;  %v652_v44 = vcvt.f32.s32 %v646_v37 }
 0x3e8   : > { %v648_v39 = vsel %vm647_vm9, %v643_v38, inf }
 0x3e9   : > { %649 = vmin.xlane.f32.xlu1 %v648_v39  ;;  %v653_v51 = vshll.u32 %v652_v44, 16 }
 0x472   : > { %v635_v41 = vpop.xlane.xlu0 %634 }
 0x473   : > { %v636_v48 = vcvt.f32.s32 %v635_v41 }
 0x475   : > { %v639_v49 = vadd.s32 %v638_v43, %v636_v48 }
 0x476   : > { %v650_v50 = vpop.xlane.xlu1 %649 }
 0x477   : > { %v651_v52 = vcvt.f32.s32 %v650_v50  ;;  %vm655_vm10 = vcmp.eq.s32.totalorder %v1350_v30, %v639_v49 }
 0x478   : > { %v659_v53 = vsel %vm655_vm10, 1e+30, %v613_v16  ;;  %vm657_vm6 = vmor %vm611_vm4, %vm655_vm10 }
 0x479   : > { %v654_v54 = vadd.s32 %v653_v51, %v651_v52  ;;  %v661_v55 = vsel %vm570_vm15, %v659_v53, inf  ;;  %v1105_v52 = vpop.eup %1104 }
 0x47a   : > { %662 = vmin.xlane.f32.xlu0 %v661_v55 }
 0x47b   : > { %vm656_vm11 = vcmp.eq.s32.totalorder %v1350_v30, %v654_v54  ;;  %v754_v54 = vmul.f32 %v1105_v52, %v1364_v46 }
 0x47c   : > { %v660_v56 = vsel %vm656_vm11, 1e+30, %v614_v19  ;;  %vm658_vm9 = vmor %vm612_vm5, %vm656_vm11 }
 0x47d   : > { %v664_v57 = vsel %vm570_vm15, %v660_v56, inf }
 0x47e   : > { %665 = vmin.xlane.f32.xlu1 %v664_v57 }
 0x507   : > { %v663_v58 = vpop.xlane.xlu0 %662 }
 0x508   : > { %vm667_vm12 = vcmp.eq.f32.partialorder %v659_v53, %v663_v58 }
 0x509   : > { %v669_v59 = vsel %vm667_vm12, %v1350_v30, 16 }
 0x50a   : > { %v671_v60 = vsel %vm570_vm15, %v669_v59, 2147483647 }
 0x50b   : > { %v666_v61 = vpop.xlane.xlu1 %665  ;;  %v673_v62 = vshra.s32 %v671_v60, 16  ;;  %v672_v5 = vand.u32 65535, %v671_v60 }
 0x50c   : > { %vm668_vm0 = vcmp.eq.f32.partialorder %v660_v56, %v666_v61 }
 0x50d   : > { %v670_v63 = vsel %vm668_vm0, %v1350_v30, 16  ;;  %v675_v0 = vcvt.s32.f32 %v673_v62  ;;  %v674_v7 = vcvt.s32.f32 %v672_v5  ;;  %vm755_vm0 = vcmp.eq.f32.partialorder %v1364_v46, inf }
 0x50e   : > { %v686_v2 = vsel %vm570_vm15, %v670_v63, 2147483647  ;;  %v756_v61 = vsel %vm755_vm0, %v1364_v46, %v754_v54 }
 0x50f   : > { %676 = vmin.xlane.f32.xlu0 %v675_v0  ;;  %v688_v3 = vshra.s32 %v686_v2, 16  ;;  %v687_v8 = vand.u32 65535, %v686_v2  ;;  %v758_v2 = vand.u32 2147483648, %v1364_v46 }
 0x511   : > { %v690_v4 = vcvt.s32.f32 %v688_v3  ;;  %v689_v11 = vcvt.s32.f32 %v687_v8 }
 0x513   : > { %691 = vmin.xlane.f32.xlu1 %v690_v4 }
 0x59c   : > { %v677_v6 = vpop.xlane.xlu0 %676 }
 0x59d   : > { %vm678_vm1 = vcmp.eq.f32.partialorder %v675_v0, %v677_v6  ;;  %v683_v14 = vcvt.f32.s32 %v677_v6 }
 0x59e   : > { %v679_v9 = vsel %vm678_vm1, %v674_v7, inf }
 0x59f   : > { %680 = vmin.xlane.f32.xlu0 %v679_v9  ;;  %v684_v16 = vshll.u32 %v683_v14, 16 }
 0x5a0   : > { %v692_v10 = vpop.xlane.xlu1 %691 }
 0x5a1   : > { %vm693_vm2 = vcmp.eq.f32.partialorder %v690_v4, %v692_v10  ;;  %v698_v18 = vcvt.f32.s32 %v692_v10 }
 0x5a2   : > { %v694_v13 = vsel %vm693_vm2, %v689_v11, inf  ;;  %vm757_vm2 = vcmp.eq.f32.partialorder %v1364_v46, 0.0  ;;  %v765_v46 = vand.u32 2147483648, %v1366_v47 }
 0x5a3   : > { %695 = vmin.xlane.f32.xlu1 %v694_v13  ;;  %v699_v22 = vshll.u32 %v698_v18, 16  ;;  %v759_v4 = vsel %vm757_vm2, %v758_v2, %v756_v61 }
 0x62c   : > { %v681_v15 = vpop.xlane.xlu0 %680 }
 0x62d   : > { %v682_v19 = vcvt.f32.s32 %v681_v15 }
 0x62f   : > { %v685_v20 = vadd.s32 %v684_v16, %v682_v19 }
 0x630   : > { %v696_v21 = vpop.xlane.xlu1 %695 }
 0x631   : > { %v697_v23 = vcvt.f32.s32 %v696_v21  ;;  %vm701_vm3 = vcmp.eq.s32.totalorder %v1350_v30, %v685_v20 }
 0x632   : > { %v705_v24 = vsel %vm701_vm3, 1e+30, %v659_v53  ;;  %vm1418_vm7 = vmor %vm657_vm6, %vm701_vm3 }
 0x633   : > { %v700_v26 = vadd.s32 %v699_v22, %v697_v23  ;;  %v707_v27 = vsel %vm570_vm15, %v705_v24, inf }
 0x634   : > { %708 = vmin.xlane.f32.xlu0 %v707_v27 }
 0x635   : > { %vm702_vm8 = vcmp.eq.s32.totalorder %v1350_v30, %v700_v26 }
 0x636   : > { %v706_v28 = vsel %vm702_vm8, 1e+30, %v660_v56  ;;  %vm1429_vm12 = vmor %vm658_vm9, %vm702_vm8  ;;  %v1107_v56 = vpop.eup %1106  ;;  %vm762_vm8 = vcmp.eq.f32.partialorder %v1366_v47, inf }
 0x637   : > { %v710_v29 = vsel %vm570_vm15, %v706_v28, inf  ;;  %v761_v62 = vmul.f32 %v1107_v56, %v1366_v47 }
 0x638   : > { %711 = vmin.xlane.f32.xlu1 %v710_v29 }
 0x639   : > { %v763_v8 = vsel %vm762_vm8, %v1366_v47, %v761_v62 }
 0x6c1   : > { %v709_v31 = vpop.xlane.xlu0 %708 }
 0x6c2   : > { %vm713_vm4 = vcmp.eq.f32.partialorder %v705_v24, %v709_v31 }
 0x6c3   : > { %v715_v32 = vsel %vm713_vm4, %v1350_v30, 16 }
 0x6c4   : > { %v717_v33 = vsel %vm570_vm15, %v715_v32, 2147483647 }
 0x6c5   : > { %v712_v34 = vpop.xlane.xlu1 %711  ;;  %v719_v35 = vshra.s32 %v717_v33, 16  ;;  %v718_v40 = vand.u32 65535, %v717_v33 }
 0x6c6   : > { %vm714_vm10 = vcmp.eq.f32.partialorder %v706_v28, %v712_v34 }
 0x6c7   : > { %v716_v17 = vsel %vm714_vm10, %v1350_v30, 16  ;;  %v721_v36 = vcvt.s32.f32 %v719_v35  ;;  %v720_v43 = vcvt.s32.f32 %v718_v40 }
 0x6c8   : > { %v732_v37 = vsel %vm570_vm15, %v716_v17, 2147483647 }
 0x6c9   : > { %722 = vmin.xlane.f32.xlu0 %v721_v36  ;;  %v734_v38 = vshra.s32 %v732_v37, 16  ;;  %v733_v44 = vand.u32 65535, %v732_v37 }
 0x6cb   : > { %v736_v39 = vcvt.s32.f32 %v734_v38  ;;  %v735_v50 = vcvt.s32.f32 %v733_v44 }
 0x6cd   : > { %737 = vmin.xlane.f32.xlu1 %v736_v39 }
 0x756   : > { %v723_v41 = vpop.xlane.xlu0 %722 }
 0x757   : > { %vm724_vm5 = vcmp.eq.f32.partialorder %v721_v36, %v723_v41  ;;  %v729_v53 = vcvt.f32.s32 %v723_v41 }
 0x758   : > { %v725_v48 = vsel %vm724_vm5, %v720_v43, inf }
 0x759   : > { %726 = vmin.xlane.f32.xlu0 %v725_v48  ;;  %v730_v57 = vshll.u32 %v729_v53, 16 }
 0x75a   : > { %v738_v49 = vpop.xlane.xlu1 %737 }
 0x75b   : > { %vm739_vm11 = vcmp.eq.f32.partialorder %v736_v39, %v738_v49  ;;  %v744_v58 = vcvt.f32.s32 %v738_v49 }
 0x75c   : > { %v740_v51 = vsel %vm739_vm11, %v735_v50, inf }
 0x75d   : > { %741 = vmin.xlane.f32.xlu1 %v740_v51  ;;  %v745_v0 = vshll.u32 %v744_v58, 16 }
 0x7e6   : > { %v727_v55 = vpop.xlane.xlu0 %726 }
 0x7e7   : > { %v728_v59 = vcvt.f32.s32 %v727_v55 }
 0x7e9   : > { %v731_v60 = vadd.s32 %v730_v57, %v728_v59 }
 0x7ea   : > { %v742_v63 = vpop.xlane.xlu1 %741 }
 0x7eb   : > { %vm747_vm1 = vcmp.eq.s32.totalorder %v1350_v30, %v731_v60  ;;  %v743_v3 = vcvt.f32.s32 %v742_v63 }
 0x7ec   : > { %vm749_vm3 = vmor %vm1418_vm7, %vm747_vm1  ;;  %vm764_vm7 = vcmp.eq.f32.partialorder %v1366_v47, 0.0 }
 0x7ed   : > { %vm751_vm6 = vmand %vm749_vm3, %vm1356_vm13  ;;  %v746_v5 = vadd.s32 %v745_v0, %v743_v3  ;;  %v766_v42 = vsel %vm764_vm7, %v765_v46, %v763_v8 }
 0x7ee   : > { %v989_v6 = vsel %vm751_vm6, 1.0, %v1222_v1  ;;  %v773_v7 = vsel %vm751_vm6, %v759_v4, 0.0 }
 0x7ef   : > { %771 = vst.msk [vmem:[%s300_s9] sm:$0xff] %vm570_vm15, %v989_v6  ;;  %775 = vst.msk [vmem:[%s307_s11] sm:$0xff] %vm570_vm15, %v773_v7  ;;  %vm748_vm13 = vcmp.eq.s32.totalorder %v1350_v30, %v746_v5 }
 0x7f0   : > { %vm750_vm9 = vmor %vm1429_vm12, %vm748_vm13 }
 0x7f1   : > { %vm752_vm4 = vmand %vm750_vm9, %vm1360_vm14 }
 0x7f2   : > { %v990_v30 = vsel %vm752_vm4, 1.0, %v1222_v1  ;;  %v774_v9 = vsel %vm752_vm4, %v766_v42, 0.0 }
 0x7f3   : > { %772 = vst.msk [vmem:[%s300_s9 + $0x8] sm:$0xff] %vm570_vm15, %v990_v30  ;;  %776 = vst.msk [vmem:[%s307_s11 + $0x8] sm:$0xff] %vm570_vm15, %v774_v9 }
 0x7f4   : > { %1121 = shalt.err (!%p1118_p5)
}
 0x7f5   : > { %s1122_s8 = scalar_lea.hbm %s1466_s13, 256  ;;  %s1126_s12 = scalar_lea.hbm %s1565_s4, 512 }
 0x7f6   : > { %p1123_p6 = scmp.ne.s32.totalorder %s1466_s13, %s1122_s8  ;;  %p1127_p10 = scmp.lt.u32.totalorder %s1466_s13, %s1565_s4 }
 0x7f7   : > { %p1128_p11 = scmp.lt.u32.totalorder %s1126_s12, %s1122_s8  ;;  %p1130_p13 = scmp.lt.u32.totalorder %s1122_s8, %s1466_s13 }
 0x7f8   : > { %p1124_p7 = pnand %p1123_p6, %p1299_p4 }
 0x7f9   : > { %p1129_p12 = por %p1128_p11, %p1127_p10 }
 0x7fa   : > { %p1125_p9 = pneg %p1124_p7 }
 0x7fb   : > { %p1131_p0 = por %p1130_p13, %p1129_p12 }
 0x7fd   : > { %p1132_p1 = pnand %p1131_p0, %p1125_p9 }
 0x7ff   : > { %1135 = shalt.err (!%p1132_p1)
}
 0x800   : > { %s1226_s25 = smov 128   ;;  %s1227_s27 = smov 8  }
 0x801   : > { %1035 = dma.vmem_to_hbm [thread:$0]  (%p1299_p4), %s1471_s10, 256, %s1466_s13, %s778_s24, %s1226_s25, %s1226_s25, %s1227_s27  }
 0x802   : > { %s783_s7 = scalar_lea.sflag [#allocation5], %s1441_s29  ;;  %s1136_s21 = scalar_lea.vmem %s1481_s14, 256 }
 0x803   : > { %p1137_p2 = scmp.ne.s32.totalorder %s1481_s14, %s1136_s21  ;;  %s1228_s8 = smov [#allocation4]  }
 0x804   : > { %s1140_s9 = sshll.u32 %s1228_s8, 4  ;;  %s1141_s9 = int_to_ptr.vmem [resolvable:$false] %s1140_s9 }
 0x805   : > { %p1138_p3 = pnand %p1137_p2, %p1299_p4  ;;  %s1142_s11 = scalar_lea.vmem %s1141_s9, 512 }
 0x806   : > { %p1143_p6 = scmp.lt.s32.totalorder %s1481_s14, %s1141_s9  ;;  %p1144_p7 = scmp.lt.s32.totalorder %s1142_s11, %s1136_s21 }
 0x807   : > { %p1139_p5 = pneg %p1138_p3 }
 0x808   : > { %p1145_p9 = por %p1144_p7, %p1143_p6 }
 0x80a   : > { %p1146_p10 = pnand %p1145_p9, %p1139_p5 }
 0x80c   : > { %1149 = shalt.err (!%p1146_p10)
}
 0x80d   : > { %s1150_s10 = scalar_lea.hbm %s1479_s17, 256  ;;  %s1154_s12 = scalar_lea.hbm %s1566_s5, 512 }
 0x80e   : > { %p1151_p11 = scmp.ne.s32.totalorder %s1479_s17, %s1150_s10  ;;  %p1155_p0 = scmp.lt.u32.totalorder %s1479_s17, %s1566_s5 }
 0x80f   : > { %p1156_p1 = scmp.lt.u32.totalorder %s1154_s12, %s1150_s10  ;;  %p1158_p3 = scmp.lt.u32.totalorder %s1150_s10, %s1479_s17 }
 0x810   : > { %p1152_p12 = pnand %p1151_p11, %p1299_p4 }
 0x811   : > { %p1157_p2 = por %p1156_p1, %p1155_p0 }
 0x812   : > { %p1153_p13 = pneg %p1152_p12 }
 0x813   : > { %p1159_p5 = por %p1158_p3, %p1157_p2 }
 0x815   : > { %p1160_p6 = pnand %p1159_p5, %p1153_p13 }
 0x817   : > { %1163 = shalt.err (!%p1160_p6)
}
 0x818   : > { %1036 = dma.vmem_to_hbm [thread:$0]  (%p1299_p4), %s1481_s14, 256, %s1479_s17, %s783_s7, %s1226_s25, %s1226_s25, %s1227_s27  }
 0x819 PF: > { %p1046_p7 = scmp.ge.s32.totalorder %s1218_s23, 2  ;;  %s831_s21 = sand.u32 1, %s1198_s18  }
 0x81a   : > { %s832_s8 = scalar_lea.sflag [#allocation3], %s831_s21 }
 0x81b   : > { %p1040_p9 = pnand %p1046_p7, %p1306_p8 }
 0x81d   : > { %1189 = dma.done.wait (!%p1040_p9), %s832_s8, 256  }
 0x81e   : > { %1191 = vsyncadd (!%p1040_p9), %s832_s8, 4294967040  ;;  %s841_s28 = scalar_lea.sflag [#allocation5], %s831_s21 }
 0x81f   : > { %1193 = dma.done.wait (!%p1040_p9), %s841_s28, 256  }
 0x820   : > { %1195 = vsyncadd (!%p1040_p9), %s841_s28, 4294967040  ;;  %s22_s23 = sadd.s32 1, %s1218_s23   ;;  %s1579_s18 = smov %s1202_s19 }
 0x821   : > { %p19_p10 = scmp.ge.s32.totalorder %s22_s23, 4   ;;  %s1580_s19 = smov %s1206_s20 }
 0x822   : > { %s1581_s20 = smov %s1312_s6  ;;  %s1582_s21 = smov %s1214_s22 }
 0x823   : > { %s1583_s22 = smov %s1585_s26  ;;  %21 = sbr.rel (!%p19_p10) target bundleno = 6 (0x6), region = 97 }
 0x82a   :  { %846 = vsyncpa [#allocation3], 1 }
 0x82b   :  { %848 = vsyncpa [#allocation3 + $0x1], 1 }
 0x82c   :  { %849 = vsyncpa [#allocation5], 1 }
 0x82d   :  { %851 = vsyncpa [#allocation5 + $0x1], 1 }

</bundles_post_ra>
